<compile_context>
chip_gen: v7x
topology: tpu7x:2x2x1
jax: 0.10.0
libtpu: 0.0.40
codegen_flags: <defaults>
</compile_context>

<pallas_src>
import functools

import jax
import jax.numpy as jnp
from jax.experimental import pallas as pl
from jax.experimental.pallas import tpu as pltpu


def _round_up(a, b):
    return ((a + b - 1) // b) * b


# ----------------------------- Pallas kernel --------------------------------
def _matmul_bias_kernel(x_ref, w_ref, b_ref, o_ref):
    # x_ref: (Kdim, TM) bf16   w_ref: (TC, Kdim) bf16
    # b_ref: (TC, 1)    f32    o_ref: (TC, TM)   f32   (lane-dense over TM)
    acc = jnp.dot(w_ref[...], x_ref[...], preferred_element_type=jnp.float32)
    o_ref[...] = (acc + b_ref[...]).astype(o_ref.dtype)


def _matmul_bias_T(x_t, w, bias, *, tm=512):
    """Transposed GEMM:  out[Cout, M] = w[Cout, Kdim] @ x_t[Kdim, M] + bias.

    x_t, w are bf16 (cast by the caller at this boundary); bias and the
    output are f32.  The output lane axis is M -> unmasked, lane-dense stores.
    """
    Kdim, M = x_t.shape
    Cout = w.shape[0]

    # Big lane tile over M to amortize per-step pipeline overhead, but never
    # larger than needed (rounded up to the 128-lane granule).
    tm = min(tm, _round_up(M, 128))

    # Optional Cout tiling: keeps the resident weight block small when the
    # channel count is large (VMEM headroom on v5e's 16 MiB scoped default and
    # v7x's 64 MiB physical VMEM).  Small Cout -> single resident tile.
    if Cout > 256 and Cout % 256 == 0:
        tc = 256
    else:
        tc = Cout

    grid = (Cout // tc, pl.cdiv(M, tm))

    cost = pl.CostEstimate(
        flops=2 * M * Kdim * Cout,
        transcendentals=0,
        bytes_accessed=(x_t.size * x_t.dtype.itemsize * (Cout // tc)
                        + w.size * w.dtype.itemsize
                        + Cout * 4
                        + M * Cout * 4),
    )

    out = pl.pallas_call(
        _matmul_bias_kernel,
        out_shape=jax.ShapeDtypeStruct((Cout, M), jnp.float32),
        grid_spec=pltpu.PrefetchScalarGridSpec(
            num_scalar_prefetch=0,
            grid=grid,
            in_specs=[
                pl.BlockSpec((Kdim, tm), lambda j, i: (0, i)),   # X_T tile
                pl.BlockSpec((tc, Kdim), lambda j, i: (j, 0)),   # weight tile
                pl.BlockSpec((tc, 1),    lambda j, i: (j, 0)),   # bias tile
            ],
            out_specs=pl.BlockSpec((tc, tm), lambda j, i: (j, i)),
        ),
        # Both axes independent -> megacore sharding (2 TCs on v7x).
        compiler_params=pltpu.CompilerParams(
            dimension_semantics=("parallel", "parallel")),
        cost_estimate=cost,
    )(x_t, w, bias.reshape(Cout, 1).astype(jnp.float32))

    return out


# ------------------------------ JAX glue -------------------------------------
def _im2col_T(x_pad, K, stride):
    """x_pad: (N, C, Hp, Wp) -> X_T: (C*K*K, N*Ho*Wo).

    Row flatten order is (C, kh, kw), matching weight.reshape(Cout, Cin*K*K);
    column order is (N, Ho, Wo), so the kernel output (Cout, N*Ho*Wo) reshapes
    to (Cout, N, Ho, Wo) with the minor (spatial) layout untouched.
    """
    N, C, Hp, Wp = x_pad.shape
    Ho = (Hp - K) // stride + 1
    Wo = (Wp - K) // stride + 1
    cols = []
    for kh in range(K):
        for kw in range(K):
            cols.append(
                x_pad[:, :, kh:kh + (Ho - 1) * stride + 1:stride,
                            kw:kw + (Wo - 1) * stride + 1:stride])  # (N,C,Ho,Wo)
    patches = jnp.stack(cols, axis=0)            # (K*K, N, C, Ho, Wo)
    patches = patches.transpose(2, 0, 1, 3, 4)   # (C, K*K, N, Ho, Wo)
    return patches.reshape(C * K * K, N * Ho * Wo), Ho, Wo


def padded_conv(x, weight, bias, *, kernel_size, stride):
    """Forward pass of PaddedConv.

    x:      (N, Cin, H, W)      NCHW, same as PyTorch
    weight: (Cout, Cin, K, K)   same as nn.Conv2d.weight
    bias:   (Cout,)             same as nn.Conv2d.bias
    returns (N, Cout, Ho, Wo)
    """
    pad = kernel_size // 2
    # nn.ReflectionPad2d == jnp.pad(mode="reflect") (no edge repetition)
    x_pad = jnp.pad(x, ((0, 0), (0, 0), (pad, pad), (pad, pad)), mode="reflect")

    x_t, Ho, Wo = _im2col_T(x_pad, kernel_size, stride)   # (Cin*K*K, N*Ho*Wo)
    Cout = weight.shape[0]
    w_col = weight.reshape(Cout, -1)                      # (Cout, Cin*K*K)

    # bf16 at the kernel boundary (halves HBM traffic, native MXU rate);
    # accumulation inside the kernel remains f32.
    out = _matmul_bias_T(x_t.astype(jnp.bfloat16),
                         w_col.astype(jnp.bfloat16),
                         bias)                            # (Cout, N*Ho*Wo) f32

    N = x.shape[0]
    # (Cout, N, Ho, Wo) -> (N, Cout, Ho, Wo): leading-axis permute only; the
    # minor (lane) layout of the kernel output is preserved.
    out = out.reshape(Cout, N, Ho, Wo).transpose(1, 0, 2, 3)
    return out.astype(x.dtype)


# ------------------------------- demo / check --------------------------------
if __name__ == "__main__":
    key = jax.random.PRNGKey(0)
    k_x, k_w, k_b = jax.random.split(key, 3)

    # Module config (small, consistent with the forward pass)
    in_channels, out_channels, kernel_size, stride = 4, 8, 3, 1
    N, H, W = 2, 16, 16

    x = jax.random.normal(k_x, (N, in_channels, H, W), dtype=jnp.float32)
    weight = jax.random.normal(
        k_w, (out_channels, in_channels, kernel_size, kernel_size),
        dtype=jnp.float32) * 0.1
    bias = jax.random.normal(k_b, (out_channels,), dtype=jnp.float32) * 0.1

    fwd = jax.jit(functools.partial(
        padded_conv, kernel_size=kernel_size, stride=stride))
    out = fwd(x, weight, bias)
    jax.block_until_ready(out)

    # Pure-JAX f32 reference (reflection pad + conv, NCHW / OIHW).
    pad = kernel_size // 2
    x_pad_ref = jnp.pad(x, ((0, 0), (0, 0), (pad, pad), (pad, pad)),
                        mode="reflect")
    ref = jax.lax.conv_general_dilated(
        x_pad_ref, weight, window_strides=(stride, stride), padding="VALID",
        dimension_numbers=("NCHW", "OIHW", "NCHW"),
        precision=jax.lax.Precision.HIGHEST) + bias.reshape(1, -1, 1, 1)

    assert out.shape == (N, out_channels, H, W), out.shape
    # Kernel inputs are bf16 (f32 accumulation), so tolerance is loosened vs a
    # pure-f32 pipeline; drift at these magnitudes is ~1e-3.
    err = float(jnp.max(jnp.abs(out - ref)))
    assert jnp.allclose(out, ref, atol=2e-2, rtol=2e-2), err
    print("KERNEL_OK")
</pallas_src>

<mosaic_0001>
module attributes {stable_mosaic.version = 11 : i64} {
  func.func @_matmul_bias_kernel(%arg0: i32, %arg1: i32, %arg2: memref<36x512xbf16, #tpu.memory_space<vmem>>, %arg3: memref<8x36xbf16, #tpu.memory_space<vmem>>, %arg4: memref<8x1xf32, #tpu.memory_space<vmem>>, %arg5: memref<8x512xf32, #tpu.memory_space<vmem>>) attributes {dimension_semantics = [#tpu.dimension_semantics<parallel>, #tpu.dimension_semantics<parallel>], iteration_bounds = array<i64: 1, 1>, scalar_prefetch = 0 : i64, scratch_operands = 0 : i64, tpu.core_type = #tpu.core_type<tc>, window_params = [{transform_indices = @transform_0, window_bounds = array<i64: 36, 512>}, {transform_indices = @transform_1, window_bounds = array<i64: 8, 36>}, {transform_indices = @transform_2, window_bounds = array<i64: 8, 1>}, {transform_indices = @transform_3, window_bounds = array<i64: 8, 512>}]} {
    %c0 = arith.constant 0 : index
    %c0_0 = arith.constant 0 : index
    %0 = vector.load %arg3[%c0, %c0_0] : memref<8x36xbf16, #tpu.memory_space<vmem>>, vector<8x36xbf16>
    %c0_1 = arith.constant 0 : index
    %c0_2 = arith.constant 0 : index
    %1 = vector.load %arg2[%c0_1, %c0_2] : memref<36x512xbf16, #tpu.memory_space<vmem>>, vector<36x512xbf16>
    %cst = arith.constant dense<0.000000e+00> : vector<8x512xf32>
    %2 = tpu.matmul %0, %1, %cst {dimension_numbers = #tpu.dot_dimension_numbers<[1], [0], [0], [1], [0, 0, 1, 1], [], []>} : vector<8x36xbf16>, vector<36x512xbf16>, vector<8x512xf32> -> vector<8x512xf32>
    %c0_3 = arith.constant 0 : index
    %c0_4 = arith.constant 0 : index
    %3 = vector.load %arg4[%c0_3, %c0_4] : memref<8x1xf32, #tpu.memory_space<vmem>>, vector<8x1xf32>
    %4 = vector.broadcast %3 : vector<8x1xf32> to vector<8x512xf32>
    %5 = arith.addf %2, %4 : vector<8x512xf32>
    %c0_5 = arith.constant 0 : index
    %c0_6 = arith.constant 0 : index
    %6 = vector.load %arg5[%c0_5, %c0_6] : memref<8x512xf32, #tpu.memory_space<vmem>>, vector<8x512xf32>
    tpu.vector_store %arg5[%c0_5, %c0_6], %5 {strides = array<i32>} : memref<8x512xf32, #tpu.memory_space<vmem>>, vector<8x512xf32>,
    return
  }
  func.func @transform_0(%arg0: i32, %arg1: i32) -> (i32, i32) {
    %c0_i32 = arith.constant 0 : i32
    %c0_i32_0 = arith.constant 0 : i32
    return %c0_i32, %arg1 : i32, i32
  }
  func.func @transform_1(%arg0: i32, %arg1: i32) -> (i32, i32) {
    %c0_i32 = arith.constant 0 : i32
    %c0_i32_0 = arith.constant 0 : i32
    return %arg0, %c0_i32 : i32, i32
  }
  func.func @transform_2(%arg0: i32, %arg1: i32) -> (i32, i32) {
    %c0_i32 = arith.constant 0 : i32
    %c0_i32_0 = arith.constant 0 : i32
    return %arg0, %c0_i32 : i32, i32
  }
  func.func @transform_3(%arg0: i32, %arg1: i32) -> (i32, i32) {
    %c0_i32 = arith.constant 0 : i32
    return %arg0, %arg1 : i32, i32
  }
}

</mosaic_0001>

<bundles_post_ra>
// kernel: padded_conv.1
= control target key start
LH: loop header
LB: loop body
LE: loop exit
PB: predicated region body
PF: predicated region fallthrough
CT: control target
= control target key end

     0   :  { %v223_v1 = vmov 0   ;;  %vm86_vm0 = vcmask 1041408   ;;  %vm82_vm1 = vcmask 293888   ;;  %s296_s0 = inlined_call_operand.vmem [shape: bf16[36,512], index: 0, kind: input, shape index: {}]   ;;  %s297_s2 = inlined_call_operand.vmem [shape: f32[8,1], index: 2, kind: input, shape index: {}]   ;;  %s298_s1 = inlined_call_operand.vmem [shape: bf16[8,36], index: 1, kind: input, shape index: {}]   ;;  %s299_s3 = inlined_call_operand.vmem [shape: f32[8,512], index: 3, kind: output, shape index: {}]  }
   0x1   :  { %v207_v0 = vld [vmem:[%s296_s0 + $0x4] ss:$16 sps:$4 sm:$0xff]   ;;  %131 = vmatprep.mubr.bf16.mxu0 %v223_v1  ;;  %172 = vmatprep.mubr.bf16.mxu1 %v223_v1  ;;  %v209_v2 = vld [vmem:[%s296_s0 + $0xc] ss:$16 sps:$4 sm:$0xff]   ;;  %v211_v3 = vld [vmem:[%s296_s0] ss:$16 sps:$4 sm:$0xff]  }
   0x2   :  { %206 = vset.pattern.permute.xlu0 %v223_v1  ;;  %99 = vmatprep.subr.bf16.mxu0 %v207_v0  ;;  %v212_v4 = vld [vmem:[%s296_s0 + $0x8] ss:$16 sps:$4 sm:$0xff]   ;;  %v213_v5 = vld [vmem:[%s296_s0 + $0x24] ss:$16 sps:$4 sm:$0xff]   ;;  %v215_v6 = vld [vmem:[%s296_s0 + $0x2c] ss:$16 sps:$4 sm:$0xff]  }
   0x3   :  { %140 = vmatprep.subr.bf16.mxu1 %v209_v2  ;;  %100 = vmatpush1.bf16.msra.mxu0 %v211_v3  ;;  %v217_v7 = vld [vmem:[%s296_s0 + $0x20] ss:$16 sps:$4 sm:$0xff]   ;;  %v218_v8 = vld [vmem:[%s296_s0 + $0x28] ss:$16 sps:$4 sm:$0xff]  }
   0x4   :  { %141 = vmatpush1.bf16.msra.mxu1 %v212_v4  ;;  %101 = vmatprep.subr.bf16.mxu0 %v213_v5  ;;  %v24_v9 = vld [vmem:[%s296_s0 + $0x40] sm:$0x33]  ;;  %v25_v10 = vld [vmem:[%s296_s0 + $0x48] sm:$0x33] }
   0x5   :  { %142 = vmatprep.subr.bf16.mxu1 %v215_v6  ;;  %v198_v11 = vcombine.high %v24_v9, %v24_v9  ;;  %v200_v12 = vcombine.high %v25_v10, %v25_v10  ;;  %v197_v13 = vcombine.low %v24_v9, %v24_v9  ;;  %v199_v14 = vcombine.low %v25_v10, %v25_v10  ;;  %v26_v15 = vld [vmem:[%s297_s2] sm:$0xff] }
   0x6   :  { %29 = vperm.xlu0 %206, %v26_v15   ;;  %v15_v18 = vld [vmem:[%s298_s1] sm:$0xf] }
   0x7   :  { %102 = vmatpush1.bf16.msra.mxu0 %v217_v7  ;;  %v88_v16 = vsel %vm86_vm0, %v197_v13, 0  ;;  %v94_v17 = vsel %vm86_vm0, %v199_v14, 0 }
   0x8   :  { %143 = vmatpush1.bf16.msra.mxu1 %v218_v8  ;;  %201 = vmatprep.subr.msk.bf16.mxu0 %vm86_vm0, %v198_v11 }
   0x9   :  { %203 = vmatprep.subr.msk.bf16.mxu1 %vm86_vm0, %v200_v12 }
   0xb   :  { %104 = vmatpush1.bf16.msra.mxu0 %v88_v16 }
   0xc   :  { %145 = vmatpush1.bf16.msra.mxu1 %v94_v17 }
   0xe   :  { %202 = vmatmul.mubr.msk.bf16.vlgmr.msra.gmra.mrb[0].mxu0 %vm82_vm1, %v15_v18 }
   0xf   :  { %204 = vmatmul.mubr.msk.bf16.vlgmr.msra.gmra.mrb[0].mxu1 %vm82_vm1, %v15_v18 }
  0x85   :  { %v30_v19 = vpop.permute.xlu0 %29 }
  0xe1   :  { %v133_v20 = vpop.f32.mrb[0].mxu0 }
  0xe2   :  { %v174_v21 = vpop.f32.mrb[0].mxu1  ;;  %v134_v22 = vadd.f32 %v133_v20, %v30_v19  ;;  %v135_v24 = vpop.f32.mrb[1].mxu0 }
  0xe3   :  { %v175_v23 = vadd.f32 %v174_v21, %v30_v19  ;;  %v176_v25 = vpop.f32.mrb[1].mxu1  ;;  %v136_v26 = vadd.f32 %v135_v24, %v30_v19  ;;  %v137_v28 = vpop.f32.mrb[2].mxu0 }
  0xe4   :  { %v177_v27 = vadd.f32 %v176_v25, %v30_v19  ;;  %v178_v29 = vpop.f32.mrb[2].mxu1  ;;  %181 = vst [vmem:[%s299_s3] sm:$0xff] %v134_v22  ;;  %v138_v30 = vpop.f32.mrb[3].mxu0 }
  0xe5   :  { %183 = vst [vmem:[%s299_s3 + $0x10] sm:$0xff] %v175_v23  ;;  %v179_v31 = vpop.f32.mrb[3].mxu1  ;;  %182 = vst [vmem:[%s299_s3 + $0x8] sm:$0xff] %v136_v26 }
  0xe6   :  { %184 = vst [vmem:[%s299_s3 + $0x18] sm:$0xff] %v177_v27 }

</bundles_post_ra>
